<compile_context>
chip_gen: v5e
topology: v5e:2x2
jax: 0.10.0
libtpu: 0.0.40
codegen_flags: <defaults>
</compile_context>

<pallas_src>
import jax
import jax.numpy as jnp
from jax.experimental import pallas as pl
from jax.experimental.pallas import tpu as pltpu

_LANES = 128
_SUBLANES = 8
_TILE = _SUBLANES * _LANES          # 1024 elements = one (8,128) f32 vreg tile
_CHUNK_ROWS = 1024                  # in-kernel compute chunk (512 KiB f32)
_MAX_BLOCK_ROWS = 8192              # DMA block: 4 MiB f32 per input tile
_EPS = 1e-8
_FALLBACK_NUM_PARALLEL = 2          # v7x has 2 TCs; harmless on v5e/v6e


def _num_tensorcores() -> int:
    """Best-effort TensorCore count; falls back to 2 (safe on 1-TC chips)."""
    try:
        info = pltpu.get_tpu_info()
    except Exception:
        return _FALLBACK_NUM_PARALLEL
    for attr in ("num_cores", "core_count", "num_tensorcores",
                 "tensorcore_count", "cores_per_chip"):
        val = getattr(info, attr, None)
        if isinstance(val, int) and val >= 1:
            return val
    return _FALLBACK_NUM_PARALLEL


def _make_kernel(chunk_rows: int, num_chunks: int):
    chunk_elems = chunk_rows * _LANES

    def kernel(gamma_ref, n_ref, yp_ref, yt_ref, psum_ref):
        # gamma_ref, n_ref : scalar-prefetch SMEM refs, shape (1,)
        # yp_ref, yt_ref   : (BLOCK_ROWS, 128) VMEM tiles (native dtype)
        # psum_ref         : (1, 8, 128) f32 output block = per-p partial sum,
        #                    resident across the "arbitrary" grid axis.
        p = pl.program_id(0)
        b = pl.program_id(1)

        @pl.when(b == 0)
        def _():
            psum_ref[...] = jnp.zeros_like(psum_ref)

        gamma = gamma_ref[0]
        n = n_ref[0]
        block_elems = num_chunks * chunk_elems
        block_base = (p * pl.num_programs(1) + b) * block_elems

        def run(pow_fn):
            # Walk the (large) resident DMA block in small chunks so the
            # elementwise temporaries stay a fraction of a MiB in VMEM.
            @pl.loop(0, num_chunks)
            def _(c):
                r0 = pl.multiple_of(c * chunk_rows, chunk_rows)
                yp = yp_ref[pl.ds(r0, chunk_rows), :].astype(jnp.float32)
                yt = yt_ref[pl.ds(r0, chunk_rows), :].astype(jnp.float32)
                diff = jnp.abs(yt - yp) + jnp.float32(_EPS)
                powed = pow_fn(diff)
                base = block_base + c * chunk_elems

                def add(vals):
                    # (C,128) -> (C//8, 8, 128); reduce over the leading
                    # (non-minor) axis = plain VPU vreg adds, no XLU, no
                    # scalar round trip.
                    psum_ref[...] += jnp.sum(
                        vals.reshape(chunk_rows // _SUBLANES, _SUBLANES,
                                     _LANES),
                        axis=0, keepdims=True)

                @pl.when(base + chunk_elems <= n)   # chunk fully in bounds
                def _():
                    add(powed)

                @pl.when(base + chunk_elems > n)    # tail / phantom chunk
                def _():
                    rem = n - base                  # may be <= 0 (phantom)
                    row = jax.lax.broadcasted_iota(jnp.int32, powed.shape, 0)
                    col = jax.lax.broadcasted_iota(jnp.int32, powed.shape, 1)
                    keep = (row * _LANES + col) < rem
                    add(jnp.where(keep, powed, jnp.float32(0.0)))

        is_square = gamma == jnp.float32(2.0)

        @pl.when(is_square)                    # gamma == 2: pure-VPU fast path
        def _():
            run(lambda d: d * d)

        @pl.when(jnp.logical_not(is_square))   # general: x**g = exp(g*log(x))
        def _():
            run(lambda d: jnp.exp(gamma * jnp.log(d)))

    return kernel


def l0_loss(y_pred, y_true, gamma):
    """Mean of (|y_true - y_pred| + 1e-8) ** gamma via a Pallas TPU kernel."""
    assert y_pred.shape == y_true.shape
    n = y_pred.size

    # Lane-dense [rows, 128] view of the flat data.  Padding is materialised
    # only when numel is not a multiple of 128 (or smaller than one (8,128)
    # tile); the common multiple-of-128 case is a zero-copy reshape and the
    # ragged edge block is masked inside the kernel.
    n_pad = max(pl.cdiv(n, _LANES) * _LANES, _TILE)
    rows = n_pad // _LANES                      # >= 8 by construction

    def _prep(x):
        flat = jnp.reshape(x, (-1,))            # free; native dtype in HBM
        if n_pad != n:
            flat = jnp.pad(flat, (0, n_pad - n))
        return jnp.reshape(flat, (rows, _LANES))

    yp2d = _prep(y_pred)
    yt2d = _prep(y_true)

    # DMA block: as large as possible (multiple of the in-kernel chunk) to
    # amortise the ~0.35 us per-grid-step overhead.
    block_rows = min(_MAX_BLOCK_ROWS, (rows // _SUBLANES) * _SUBLANES)
    if block_rows >= _CHUNK_ROWS:
        block_rows = (block_rows // _CHUNK_ROWS) * _CHUNK_ROWS
        chunk_rows = _CHUNK_ROWS
    else:
        chunk_rows = block_rows
    num_chunks = block_rows // chunk_rows

    num_blocks = pl.cdiv(rows, block_rows)
    num_tc = _num_tensorcores()
    num_parallel = num_tc if num_blocks >= num_tc else 1
    blocks_per_p = pl.cdiv(num_blocks, num_parallel)

    # Flat tail-index math inside the kernel is int32.
    assert num_parallel * blocks_per_p * block_rows * _LANES < 2**31, (
        "L0Loss Pallas kernel requires numel < 2**31")

    def _in_map(p, b, gamma_ref, n_ref):
        # Clamp phantom grid cells (p*blocks_per_p + b >= num_blocks) onto
        # the last real block; their contribution is masked in the kernel.
        blk = p * blocks_per_p + b
        return (jnp.minimum(blk, num_blocks - 1), 0)

    itemsize = (jnp.dtype(y_pred.dtype).itemsize
                + jnp.dtype(y_true.dtype).itemsize)
    tile_bytes = block_rows * _LANES * itemsize      # one grid step, 2 inputs
    # 2x double-buffered input tiles + in-kernel chunk temporaries + slack.
    vmem_limit = int(2 * tile_bytes + (12 << 20))

    cost = pl.CostEstimate(
        flops=5 * n,                   # sub + abs + add + mul + accumulate
        transcendentals=2 * n,         # exp + log (general-gamma path)
        bytes_accessed=n * itemsize + num_parallel * _TILE * 4)

    partial = pl.pallas_call(
        _make_kernel(chunk_rows, num_chunks),
        out_shape=jax.ShapeDtypeStruct(
            (num_parallel, _SUBLANES, _LANES), jnp.float32),
        grid_spec=pltpu.PrefetchScalarGridSpec(
            num_scalar_prefetch=2,
            grid=(num_parallel, blocks_per_p),
            in_specs=[
                pl.BlockSpec((block_rows, _LANES), _in_map),
                pl.BlockSpec((block_rows, _LANES), _in_map),
            ],
            out_specs=pl.BlockSpec(
                (1, _SUBLANES, _LANES), lambda p, b, g, nn: (p, 0, 0)),
        ),
        compiler_params=pltpu.CompilerParams(
            dimension_semantics=("parallel", "arbitrary"),
            vmem_limit_bytes=vmem_limit),
        cost_estimate=cost,
    )(
        jnp.reshape(jnp.asarray(gamma, dtype=jnp.float32), (1,)),
        jnp.array([n], dtype=jnp.int32),
        yp2d,
        yt2d,
    )

    # Tiny final cross-lane/sublane reduce + mean in plain JAX.
    return jnp.sum(partial) / jnp.float32(n)


if __name__ == "__main__":
    # Deterministic parameter init (matches nn.Parameter(torch.tensor(2.0))).
    gamma = jnp.float32(2.0)

    def _ref(yp, yt, g):
        return jnp.mean((jnp.abs(yt - yp) + 1e-8) ** g)

    key = jax.random.PRNGKey(0)

    # Primary example: NCHW [2, 4, 16, 16] (2048 elems, zero-copy, 1 block).
    k1, k2 = jax.random.split(key)
    shape = (2, 4, 16, 16)
    y_pred = jax.random.normal(k1, shape, dtype=jnp.float32)
    y_true = jax.random.normal(k2, shape, dtype=jnp.float32)
    loss = jax.block_until_ready(l0_loss(y_pred, y_true, gamma))
    assert jnp.allclose(loss, _ref(y_pred, y_true, gamma),
                        rtol=1e-5, atol=1e-6), loss

    # numel % 128 == 0 but rows not aligned to the block: zero-copy path with
    # an in-kernel masked edge block + gamma==2 VPU fast path (1280 elems).
    k3, k4 = jax.random.split(k2)
    shape2 = (2, 5, 128)
    yp2 = jax.random.normal(k3, shape2, dtype=jnp.float32)
    yt2 = jax.random.normal(k4, shape2, dtype=jnp.float32)
    loss2 = jax.block_until_ready(l0_loss(yp2, yt2, gamma))
    assert jnp.allclose(loss2, _ref(yp2, yt2, gamma),
                        rtol=1e-5, atol=1e-6), loss2

    # Multi-block path: 3 blocks of 8192 rows -> both grid axes, the chunked
    # inner loop, a partial tail block and (with 2 TCs) a phantom block.
    k5, k6 = jax.random.split(k4)
    shape3 = (40, 16, 64, 64)                 # 2,621,440 elements
    yp3 = jax.random.normal(k5, shape3, dtype=jnp.float32)
    yt3 = jax.random.normal(k6, shape3, dtype=jnp.float32)
    loss3 = jax.block_until_ready(l0_loss(yp3, yt3, gamma))
    assert jnp.allclose(loss3, _ref(yp3, yt3, gamma),
                        rtol=1e-4, atol=1e-6), loss3

    # Ragged size exercising the (only-when-needed) pad, the tail mask and
    # the general exp/log pow path (non-integer gamma).
    k7, k8 = jax.random.split(k6)
    shape4 = (3, 5, 7, 11)                    # 1155 elements
    yp4 = jax.random.normal(k7, shape4, dtype=jnp.float32)
    yt4 = jax.random.normal(k8, shape4, dtype=jnp.float32)
    g4 = jnp.float32(1.3)
    loss4 = jax.block_until_ready(l0_loss(yp4, yt4, g4))
    assert jnp.allclose(loss4, _ref(yp4, yt4, g4),
                        rtol=1e-5, atol=1e-6), loss4

    print("KERNEL_OK")
</pallas_src>

<mosaic_0001>
module attributes {stable_mosaic.version = 11 : i64} {
  func.func @kernel(%arg0: i32, %arg1: i32, %arg2: memref<1xf32, #tpu.memory_space<smem>>, %arg3: memref<1xi32, #tpu.memory_space<smem>>, %arg4: memref<16x128xf32, #tpu.memory_space<vmem>>, %arg5: memref<16x128xf32, #tpu.memory_space<vmem>>, %arg6: memref<1x8x128xf32, #tpu.memory_space<vmem>>) attributes {dimension_semantics = [#tpu.dimension_semantics<parallel>, #tpu.dimension_semantics<arbitrary>], iteration_bounds = array<i64: 1, 1>, scalar_prefetch = 2 : i64, scratch_operands = 0 : i64, tpu.core_type = #tpu.core_type<tc>, window_params = [{transform_indices = @transform_0, window_bounds = array<i64: 16, 128>}, {transform_indices = @transform_1, window_bounds = array<i64: 16, 128>}, {transform_indices = @transform_2, window_bounds = array<i64: 1, 8, 128>}]} {
    %c0_i32 = arith.constant 0 : i32
    %0 = arith.cmpi eq, %arg1, %c0_i32 : i32
    %1 = arith.extui %0 : i1 to i32
    %c0_i32_0 = arith.constant 0 : i32
    %2 = arith.cmpi ne, %1, %c0_i32_0 : i32
    scf.if %2 {
      %cst_4 = arith.constant 0.000000e+00 : f32
      %14 = vector.broadcast %cst_4 : f32 to vector<1x8x128xf32>
      %c0_5 = arith.constant 0 : index
      %c0_6 = arith.constant 0 : index
      %c0_7 = arith.constant 0 : index
      %15 = vector.load %arg6[%c0_5, %c0_6, %c0_7] : memref<1x8x128xf32, #tpu.memory_space<vmem>>, vector<1x8x128xf32>
      tpu.vector_store %arg6[%c0_5, %c0_6, %c0_7], %14 {strides = array<i32>} : memref<1x8x128xf32, #tpu.memory_space<vmem>>, vector<1x8x128xf32>,
    } else {
    }
    %c0 = arith.constant 0 : index
    %3 = memref.load %arg2[%c0] : memref<1xf32, #tpu.memory_space<smem>>
    %c0_1 = arith.constant 0 : index
    %4 = memref.load %arg3[%c0_1] : memref<1xi32, #tpu.memory_space<smem>>
    %c1_i32 = arith.constant 1 : i32
    %5 = arith.muli %arg0, %c1_i32 : i32
    %6 = arith.addi %5, %arg1 : i32
    %c2048_i32 = arith.constant 2048 : i32
    %7 = arith.muli %6, %c2048_i32 : i32
    %cst = arith.constant 2.000000e+00 : f32
    %8 = arith.cmpf oeq, %3, %cst : f32
    %9 = arith.extui %8 : i1 to i32
    %c0_i32_2 = arith.constant 0 : i32
    %10 = arith.cmpi ne, %9, %c0_i32_2 : i32
    scf.if %10 {
      %c0_i32_4 = arith.constant 0 : i32
      %c1_i32_5 = arith.constant 1 : i32
      %14 = arith.muli %c0_i32_4, %c1_i32_5 : i32
      %c0_i32_6 = arith.constant 0 : i32
      %15 = arith.addi %c0_i32_6, %14 : i32
      %c16_i32 = arith.constant 16 : i32
      %16 = arith.muli %15, %c16_i32 : i32
      %17 = tpu.assume_multiple %16, 16 : i32
      %18 = arith.index_cast %17 : i32 to index
      %c0_7 = arith.constant 0 : index
      %19 = vector.load %arg4[%18, %c0_7] : memref<16x128xf32, #tpu.memory_space<vmem>>, vector<16x128xf32>
      %20 = arith.index_cast %17 : i32 to index
      %c0_8 = arith.constant 0 : index
      %21 = vector.load %arg5[%20, %c0_8] : memref<16x128xf32, #tpu.memory_space<vmem>>, vector<16x128xf32>
      %22 = arith.subf %21, %19 : vector<16x128xf32>
      %23 = math.absf %22 : vector<16x128xf32>
      %cst_9 = arith.constant 9.99999993E-9 : f32
      %24 = vector.broadcast %cst_9 : f32 to vector<16x128xf32>
      %25 = arith.addf %23, %24 : vector<16x128xf32>
      %26 = arith.mulf %25, %25 : vector<16x128xf32>
      %c2048_i32_10 = arith.constant 2048 : i32
      %27 = arith.muli %15, %c2048_i32_10 : i32
      %28 = arith.addi %7, %27 : i32
      %c2048_i32_11 = arith.constant 2048 : i32
      %29 = arith.addi %28, %c2048_i32_11 : i32
      %30 = arith.cmpi sle, %29, %4 : i32
      %31 = arith.extui %30 : i1 to i32
      %c0_i32_12 = arith.constant 0 : i32
      %32 = arith.cmpi ne, %31, %c0_i32_12 : i32
      scf.if %32 {
        %c0_16 = arith.constant 0 : index
        %c0_17 = arith.constant 0 : index
        %c0_18 = arith.constant 0 : index
        %37 = vector.load %arg6[%c0_16, %c0_17, %c0_18] : memref<1x8x128xf32, #tpu.memory_space<vmem>>, vector<1x8x128xf32>
        %38 = vector.shape_cast %26 : vector<16x128xf32> to vector<2x8x128xf32>
        %cst_19 = arith.constant dense<0.000000e+00> : vector<8x128xf32>
        %39 = vector.multi_reduction <add>, %38, %cst_19 [0] : vector<2x8x128xf32> to vector<8x128xf32>
        %40 = vector.shape_cast %39 : vector<8x128xf32> to vector<1x8x128xf32>
        %41 = arith.addf %37, %40 : vector<1x8x128xf32>
        %c0_20 = arith.constant 0 : index
        %c0_21 = arith.constant 0 : index
        %c0_22 = arith.constant 0 : index
        %42 = vector.load %arg6[%c0_20, %c0_21, %c0_22] : memref<1x8x128xf32, #tpu.memory_space<vmem>>, vector<1x8x128xf32>
        tpu.vector_store %arg6[%c0_20, %c0_21, %c0_22], %41 {strides = array<i32>} : memref<1x8x128xf32, #tpu.memory_space<vmem>>, vector<1x8x128xf32>,
      } else {
      }
      %c2048_i32_13 = arith.constant 2048 : i32
      %33 = arith.addi %28, %c2048_i32_13 : i32
      %34 = arith.cmpi sgt, %33, %4 : i32
      %35 = arith.extui %34 : i1 to i32
      %c0_i32_14 = arith.constant 0 : i32
      %36 = arith.cmpi ne, %35, %c0_i32_14 : i32
      scf.if %36 {
        %37 = arith.subi %4, %28 : i32
        %38 = tpu.iota {dimensions = array<i32: 0>} : vector<16x128xi32>
        %39 = tpu.iota {dimensions = array<i32: 1>} : vector<16x128xi32>
        %c128_i32 = arith.constant 128 : i32
        %40 = vector.broadcast %c128_i32 : i32 to vector<16x128xi32>
        %41 = arith.muli %38, %40 : vector<16x128xi32>
        %42 = arith.addi %41, %39 : vector<16x128xi32>
        %43 = vector.broadcast %37 : i32 to vector<16x128xi32>
        %44 = arith.cmpi slt, %42, %43 : vector<16x128xi32>
        %cst_16 = arith.constant 0.000000e+00 : f32
        %45 = vector.broadcast %cst_16 : f32 to vector<16x128xf32>
        %46 = arith.select %44, %26, %45 : vector<16x128xi1>, vector<16x128xf32>
        %c0_17 = arith.constant 0 : index
        %c0_18 = arith.constant 0 : index
        %c0_19 = arith.constant 0 : index
        %47 = vector.load %arg6[%c0_17, %c0_18, %c0_19] : memref<1x8x128xf32, #tpu.memory_space<vmem>>, vector<1x8x128xf32>
        %48 = vector.shape_cast %46 : vector<16x128xf32> to vector<2x8x128xf32>
        %cst_20 = arith.constant dense<0.000000e+00> : vector<8x128xf32>
        %49 = vector.multi_reduction <add>, %48, %cst_20 [0] : vector<2x8x128xf32> to vector<8x128xf32>
        %50 = vector.shape_cast %49 : vector<8x128xf32> to vector<1x8x128xf32>
        %51 = arith.addf %47, %50 : vector<1x8x128xf32>
        %c0_21 = arith.constant 0 : index
        %c0_22 = arith.constant 0 : index
        %c0_23 = arith.constant 0 : index
        %52 = vector.load %arg6[%c0_21, %c0_22, %c0_23] : memref<1x8x128xf32, #tpu.memory_space<vmem>>, vector<1x8x128xf32>
        tpu.vector_store %arg6[%c0_21, %c0_22, %c0_23], %51 {strides = array<i32>} : memref<1x8x128xf32, #tpu.memory_space<vmem>>, vector<1x8x128xf32>,
      } else {
      }
      %c1_i32_15 = arith.constant 1 : i32
    } else {
    }
    %true = arith.constant true
    %11 = arith.xori %8, %true : i1
    %12 = arith.extui %11 : i1 to i32
    %c0_i32_3 = arith.constant 0 : i32
    %13 = arith.cmpi ne, %12, %c0_i32_3 : i32
    scf.if %13 {
      %c0_i32_4 = arith.constant 0 : i32
      %c1_i32_5 = arith.constant 1 : i32
      %14 = arith.muli %c0_i32_4, %c1_i32_5 : i32
      %c0_i32_6 = arith.constant 0 : i32
      %15 = arith.addi %c0_i32_6, %14 : i32
      %c16_i32 = arith.constant 16 : i32
      %16 = arith.muli %15, %c16_i32 : i32
      %17 = tpu.assume_multiple %16, 16 : i32
      %18 = arith.index_cast %17 : i32 to index
      %c0_7 = arith.constant 0 : index
      %19 = vector.load %arg4[%18, %c0_7] : memref<16x128xf32, #tpu.memory_space<vmem>>, vector<16x128xf32>
      %20 = arith.index_cast %17 : i32 to index
      %c0_8 = arith.constant 0 : index
      %21 = vector.load %arg5[%20, %c0_8] : memref<16x128xf32, #tpu.memory_space<vmem>>, vector<16x128xf32>
      %22 = arith.subf %21, %19 : vector<16x128xf32>
      %23 = math.absf %22 : vector<16x128xf32>
      %cst_9 = arith.constant 9.99999993E-9 : f32
      %24 = vector.broadcast %cst_9 : f32 to vector<16x128xf32>
      %25 = arith.addf %23, %24 : vector<16x128xf32>
      %26 = math.log %25 : vector<16x128xf32>
      %27 = vector.broadcast %3 : f32 to vector<16x128xf32>
      %28 = arith.mulf %27, %26 : vector<16x128xf32>
      %29 = math.exp %28 : vector<16x128xf32>
      %c2048_i32_10 = arith.constant 2048 : i32
      %30 = arith.muli %15, %c2048_i32_10 : i32
      %31 = arith.addi %7, %30 : i32
      %c2048_i32_11 = arith.constant 2048 : i32
      %32 = arith.addi %31, %c2048_i32_11 : i32
      %33 = arith.cmpi sle, %32, %4 : i32
      %34 = arith.extui %33 : i1 to i32
      %c0_i32_12 = arith.constant 0 : i32
      %35 = arith.cmpi ne, %34, %c0_i32_12 : i32
      scf.if %35 {
        %c0_16 = arith.constant 0 : index
        %c0_17 = arith.constant 0 : index
        %c0_18 = arith.constant 0 : index
        %40 = vector.load %arg6[%c0_16, %c0_17, %c0_18] : memref<1x8x128xf32, #tpu.memory_space<vmem>>, vector<1x8x128xf32>
        %41 = vector.shape_cast %29 : vector<16x128xf32> to vector<2x8x128xf32>
        %cst_19 = arith.constant dense<0.000000e+00> : vector<8x128xf32>
        %42 = vector.multi_reduction <add>, %41, %cst_19 [0] : vector<2x8x128xf32> to vector<8x128xf32>
        %43 = vector.shape_cast %42 : vector<8x128xf32> to vector<1x8x128xf32>
        %44 = arith.addf %40, %43 : vector<1x8x128xf32>
        %c0_20 = arith.constant 0 : index
        %c0_21 = arith.constant 0 : index
        %c0_22 = arith.constant 0 : index
        %45 = vector.load %arg6[%c0_20, %c0_21, %c0_22] : memref<1x8x128xf32, #tpu.memory_space<vmem>>, vector<1x8x128xf32>
        tpu.vector_store %arg6[%c0_20, %c0_21, %c0_22], %44 {strides = array<i32>} : memref<1x8x128xf32, #tpu.memory_space<vmem>>, vector<1x8x128xf32>,
      } else {
      }
      %c2048_i32_13 = arith.constant 2048 : i32
      %36 = arith.addi %31, %c2048_i32_13 : i32
      %37 = arith.cmpi sgt, %36, %4 : i32
      %38 = arith.extui %37 : i1 to i32
      %c0_i32_14 = arith.constant 0 : i32
      %39 = arith.cmpi ne, %38, %c0_i32_14 : i32
      scf.if %39 {
        %40 = arith.subi %4, %31 : i32
        %41 = tpu.iota {dimensions = array<i32: 0>} : vector<16x128xi32>
        %42 = tpu.iota {dimensions = array<i32: 1>} : vector<16x128xi32>
        %c128_i32 = arith.constant 128 : i32
        %43 = vector.broadcast %c128_i32 : i32 to vector<16x128xi32>
        %44 = arith.muli %41, %43 : vector<16x128xi32>
        %45 = arith.addi %44, %42 : vector<16x128xi32>
        %46 = vector.broadcast %40 : i32 to vector<16x128xi32>
        %47 = arith.cmpi slt, %45, %46 : vector<16x128xi32>
        %cst_16 = arith.constant 0.000000e+00 : f32
        %48 = vector.broadcast %cst_16 : f32 to vector<16x128xf32>
        %49 = arith.select %47, %29, %48 : vector<16x128xi1>, vector<16x128xf32>
        %c0_17 = arith.constant 0 : index
        %c0_18 = arith.constant 0 : index
        %c0_19 = arith.constant 0 : index
        %50 = vector.load %arg6[%c0_17, %c0_18, %c0_19] : memref<1x8x128xf32, #tpu.memory_space<vmem>>, vector<1x8x128xf32>
        %51 = vector.shape_cast %49 : vector<16x128xf32> to vector<2x8x128xf32>
        %cst_20 = arith.constant dense<0.000000e+00> : vector<8x128xf32>
        %52 = vector.multi_reduction <add>, %51, %cst_20 [0] : vector<2x8x128xf32> to vector<8x128xf32>
        %53 = vector.shape_cast %52 : vector<8x128xf32> to vector<1x8x128xf32>
        %54 = arith.addf %50, %53 : vector<1x8x128xf32>
        %c0_21 = arith.constant 0 : index
        %c0_22 = arith.constant 0 : index
        %c0_23 = arith.constant 0 : index
        %55 = vector.load %arg6[%c0_21, %c0_22, %c0_23] : memref<1x8x128xf32, #tpu.memory_space<vmem>>, vector<1x8x128xf32>
        tpu.vector_store %arg6[%c0_21, %c0_22, %c0_23], %54 {strides = array<i32>} : memref<1x8x128xf32, #tpu.memory_space<vmem>>, vector<1x8x128xf32>,
      } else {
      }
      %c1_i32_15 = arith.constant 1 : i32
    } else {
    }
    return
  }
  func.func @transform_0(%arg0: i32, %arg1: i32, %arg2: memref<1xf32, #tpu.memory_space<smem>>, %arg3: memref<1xi32, #tpu.memory_space<smem>>) -> (i32, i32) {
    %c1_i32 = arith.constant 1 : i32
    %0 = arith.muli %arg0, %c1_i32 : i32
    %1 = arith.addi %0, %arg1 : i32
    %c0_i32 = arith.constant 0 : i32
    %2 = arith.minsi %1, %c0_i32 : i32
    %c0_i32_0 = arith.constant 0 : i32
    %c0_i32_1 = arith.constant 0 : i32
    return %2, %c0_i32_0 : i32, i32
  }
  func.func @transform_1(%arg0: i32, %arg1: i32, %arg2: memref<1xf32, #tpu.memory_space<smem>>, %arg3: memref<1xi32, #tpu.memory_space<smem>>) -> (i32, i32) {
    %c1_i32 = arith.constant 1 : i32
    %0 = arith.muli %arg0, %c1_i32 : i32
    %1 = arith.addi %0, %arg1 : i32
    %c0_i32 = arith.constant 0 : i32
    %2 = arith.minsi %1, %c0_i32 : i32
    %c0_i32_0 = arith.constant 0 : i32
    %c0_i32_1 = arith.constant 0 : i32
    return %2, %c0_i32_0 : i32, i32
  }
  func.func @transform_2(%arg0: i32, %arg1: i32, %arg2: memref<1xf32, #tpu.memory_space<smem>>, %arg3: memref<1xi32, #tpu.memory_space<smem>>) -> (i32, i32, i32) {
    %c0_i32 = arith.constant 0 : i32
    %c0_i32_0 = arith.constant 0 : i32
    %c0_i32_1 = arith.constant 0 : i32
    return %arg0, %c0_i32, %c0_i32_0 : i32, i32, i32
  }
}

</mosaic_0001>

<bundles_post_ra>
// kernel: tpu_custom_call.1
= control target key start
LH: loop header
LB: loop body
LE: loop exit
PB: predicated region body
PF: predicated region fallthrough
CT: control target
= control target key end

     0   :  { %11 = vsyncpa [#allocation6], 0  ;;  %s375_s0 = inlined_call_operand.<no memory space> [shape: f32[1], index: 0, kind: input, shape index: {}]   ;;  %s376_s1 = inlined_call_operand.<no memory space> [shape: s32[1], index: 1, kind: input, shape index: {}]   ;;  %s377_s2 = inlined_call_operand.hbm [shape: f32[16,128], index: 2, kind: input, shape index: {}]   ;;  %s378_s3 = inlined_call_operand.hbm [shape: f32[16,128], index: 3, kind: input, shape index: {}]   ;;  %s379_s4 = inlined_call_operand.hbm [shape: f32[1,8,128], index: 4, kind: output, shape index: {}]  }
   0x1   :  { %12 = vsyncpa [#allocation9], 0 }
   0x2   :  { %13 = vsyncpa [#allocation7], 0  ;;  %s24_s17 = sshll.u32 %s377_s2, 4  ;;  %s303_s18 = smov [#allocation5]   ;;  %s25_s17 = int_to_ptr.hbm [resolvable:$true] %s24_s17 }
   0x3   :  { %s26_s19 = sshll.u32 %s303_s18, 4  ;;  %s43_s22 = sshll.u32 %s378_s3, 4  ;;  %s27_s19 = int_to_ptr.vmem [resolvable:$true] %s26_s19  ;;  %s44_s22 = int_to_ptr.hbm [resolvable:$true] %s43_s22 }
   0x4   :  { %s304_s23 = smov 128   ;;  %s305_s24 = smov 8  }
   0x5   :  { %32 = dma.hbm_to_vmem [thread:$0]  %s25_s17, 256, %s27_s19, [#allocation6], %s304_s23, %s304_s23, %s305_s24  }
   0x6   :  { %s306_s25 = smov [#allocation8]  }
   0x7   :  { %s45_s26 = sshll.u32 %s306_s25, 4  ;;  %s46_s26 = int_to_ptr.vmem [resolvable:$true] %s45_s26 }
   0x8   :  { %51 = dma.hbm_to_vmem [thread:$0]  %s44_s22, 256, %s46_s26, [#allocation9], %s304_s23, %s304_s23, %s305_s24  }
   0x9   :  { %297 = dma.done.wait [#allocation6], 256  }
   0xa   :  { %298 = vsyncadd [#allocation6], 4294967040 }
   0xb   :  { %299 = dma.done.wait [#allocation9], 256  }
   0xc   :  { %300 = vsyncadd [#allocation9], 4294967040  ;;  %p77_p0 = scmp.eq.f32.partialorder %s375_s0, 2.0  ;;  %v307_v0 = vmov 0.0  }
   0xd   :  { %72 = vst [vmem:[#allocation10] sm:$0xff] %v307_v0  ;;  %v81_v1 = vld [vmem:[#allocation5] sm:$0xff] (%p77_p0)  ;;  %v82_v2 = vld [vmem:[#allocation5 + $0x8] sm:$0xff] (%p77_p0)  ;;  %v83_v3 = vld [vmem:[#allocation8] sm:$0xff] (%p77_p0)  ;;  %p204_p1 = scmp.lt.s32.totalorder (%p77_p0), %s376_s1, 2048 }
   0xe   :  { %80 = sbr.rel (!%p77_p0) target bundleno = 53 (0x35), region = 25  ;;  %v84_v4 = vld [vmem:[#allocation8 + $0x8] sm:$0xff] (%p77_p0)  ;;  %v85_v5 = vsub.f32 (%p77_p0), %v83_v3, %v81_v1 }
   0xf   :  { %v86_v6 = vsub.f32 (%p77_p0), %v84_v4, %v82_v2 }
  0x10   :  { %v87_v7 = vand.u32 (%p77_p0), 2147483647, %v85_v5 }
  0x11   :  { %v88_v8 = vand.u32 (%p77_p0), 2147483647, %v86_v6 }
  0x12   :  { %v89_v9 = vadd.f32 (%p77_p0), 1e-08, %v87_v7 }
  0x13   :  { %v90_v10 = vadd.f32 1e-08, %v88_v8  ;;  %97 = sbr.rel (%p204_p1) target bundleno = 29 (0x1d), region = 29 }
  0x14   :  { %v91_v11 = vmul.f32 %v89_v9, %v89_v9 }
  0x15   :  { %v92_v12 = vmul.f32 %v90_v10, %v90_v10 }
  0x18   :  { %v98_v13 = vld [vmem:[#allocation10] sm:$0xff]  ;;  %v99_v14 = vadd.f32 %v92_v12, %v91_v11 }
  0x1a   :  { %v100_v15 = vadd.f32 %v99_v14, %v98_v13 }
  0x1c   :  { %101 = vst [vmem:[#allocation10] sm:$0xff] %v100_v15 }
  0x1d PF:  { %p206_p2 = scmp.ge.s32.totalorder %s376_s1, 2048 }
  0x1f   :  { %105 = sbr.rel (%p206_p2) target bundleno = 53 (0x35), region = 33 }
  0x24   :  { %v107_v16 = vlaneseq  ;;  %v116_v21 = vstv %s376_s1  ;;  %v121_v27 = vld [vmem:[#allocation10] sm:$0xff] }
  0x26   :  { %v108_v17 = vshrl.u32 %v107_v16, 7  ;;  %v111_v18 = vand.u32 127, %v107_v16 }
  0x28   :  { %v109_v19 = vadd.s32 8, %v108_v17  ;;  %v112_v20 = vmul.u32 128, %v108_v17 }
  0x2a   :  { %v113_v22 = vmul.u32 128, %v109_v19  ;;  %v114_v23 = vadd.s32 %v112_v20, %v111_v18 }
  0x2c   :  { %v115_v24 = vadd.s32 %v113_v22, %v111_v18  ;;  %vm117_vm0 = vcmp.lt.s32.totalorder %v114_v23, %v116_v21 }
  0x2d   :  { %v119_v25 = vsel %vm117_vm0, %v91_v11, 0.0 }
  0x2e   :  { %vm118_vm1 = vcmp.lt.s32.totalorder %v115_v24, %v116_v21 }
  0x2f   :  { %v120_v26 = vsel %vm118_vm1, %v92_v12, 0.0 }
  0x30   :  { %v122_v28 = vadd.f32 %v120_v26, %v119_v25 }
  0x32   :  { %v123_v29 = vadd.f32 %v122_v28, %v121_v27 }
  0x34   :  { %124 = vst [vmem:[#allocation10] sm:$0xff] %v123_v29 }
  0x35 PF:  { %127 = sbr.rel (%p77_p0) target bundleno = 115 (0x73), region = 37  ;;  %p208_p3 = scmp.lt.s32.totalorder (!%p77_p0), %s376_s1, 2048 }
  0x3a   :  { %v128_v30 = vld [vmem:[#allocation5] sm:$0xff]  ;;  %v129_v31 = vld [vmem:[#allocation5 + $0x8] sm:$0xff]  ;;  %v130_v32 = vld [vmem:[#allocation8] sm:$0xff]  ;;  %v142_v41 = vstv %s375_s0 }
  0x3b   :  { %v131_v33 = vld [vmem:[#allocation8 + $0x8] sm:$0xff]  ;;  %v132_v34 = vsub.f32 %v130_v32, %v128_v30 }
  0x3c   :  { %v133_v35 = vsub.f32 %v131_v33, %v129_v31 }
  0x3d   :  { %v134_v36 = vand.u32 2147483647, %v132_v34 }
  0x3e   :  { %v135_v37 = vand.u32 2147483647, %v133_v35 }
  0x3f   :  { %v136_v38 = vadd.f32 1e-08, %v134_v36 }
  0x40   :  { %v137_v39 = vadd.f32 1e-08, %v135_v37 }
  0x41   :  { %217 = vlog2.f32 %v136_v38 }
  0x42   :  { %219 = vlog2.f32 %v137_v39 }
  0x47   :  { %v218_v40 = vpop.eup %217 }
  0x48   :  { %v220_v42 = vpop.eup %219  ;;  %v139_v43 = vmul.f32 0.6931472, %v218_v40 }
  0x49   :  { %v141_v44 = vmul.f32 0.6931472, %v220_v42 }
  0x4a   :  { %v143_v45 = vmul.f32 %v142_v41, %v139_v43 }
  0x4b   :  { %v144_v46 = vmul.f32 %v142_v41, %v141_v44 }
  0x4c   :  { %v145_v47 = vmul.f32 1.442695, %v143_v45 }
  0x4d   :  { %v147_v48 = vmul.f32 1.442695, %v144_v46 }
  0x4e   :  { %221 = vpow2.f32 %v145_v47 }
  0x4f   :  { %223 = vpow2.f32 %v147_v48 }
  0x51   :  { %153 = sbr.rel (%p208_p3) target bundleno = 91 (0x5b), region = 41 }
  0x54   :  { %v222_v49 = vpop.eup %221 }
  0x55   :  { %v224_v50 = vpop.eup %223 }
  0x56   :  { %v154_v51 = vld [vmem:[#allocation10] sm:$0xff]  ;;  %v155_v52 = vadd.f32 %v224_v50, %v222_v49 }
  0x58   :  { %v156_v53 = vadd.f32 %v155_v52, %v154_v51 }
  0x5a   :  { %157 = vst [vmem:[#allocation10] sm:$0xff] %v156_v53 }
  0x5b PF:  { %p210_p4 = scmp.ge.s32.totalorder %s376_s1, 2048 }
  0x5d   :  { %161 = sbr.rel (%p210_p4) target bundleno = 115 (0x73), region = 45 }
  0x62   :  { %v163_v54 = vlaneseq  ;;  %v172_v59 = vstv %s376_s1  ;;  %v177_v1 = vld [vmem:[#allocation10] sm:$0xff] }
  0x64   :  { %v164_v55 = vshrl.u32 %v163_v54, 7  ;;  %v167_v56 = vand.u32 127, %v163_v54 }
  0x66   :  { %v165_v57 = vadd.s32 8, %v164_v55  ;;  %v168_v58 = vmul.u32 128, %v164_v55 }
  0x68   :  { %v169_v60 = vmul.u32 128, %v165_v57  ;;  %v170_v61 = vadd.s32 %v168_v58, %v167_v56 }
  0x6a   :  { %v171_v62 = vadd.s32 %v169_v60, %v167_v56  ;;  %vm173_vm2 = vcmp.lt.s32.totalorder %v170_v61, %v172_v59 }
  0x6b   :  { %v175_v63 = vsel %vm173_vm2, %v222_v49, 0.0 }
  0x6c   :  { %vm174_vm3 = vcmp.lt.s32.totalorder %v171_v62, %v172_v59 }
  0x6d   :  { %v176_v0 = vsel %vm174_vm3, %v224_v50, 0.0 }
  0x6e   :  { %v178_v2 = vadd.f32 %v176_v0, %v175_v63 }
  0x70   :  { %v179_v3 = vadd.f32 %v178_v2, %v177_v1 }
  0x72   :  { %180 = vst [vmem:[#allocation10] sm:$0xff] %v179_v3 }
  0x73 PF:  { %s188_s20 = sshll.u32 %s379_s4, 4  ;;  %s308_s21 = smov [#allocation10]   ;;  %s189_s20 = int_to_ptr.hbm [resolvable:$true] %s188_s20 }
  0x74   :  { %s186_s22 = sshll.u32 %s308_s21, 4  ;;  %s187_s22 = int_to_ptr.vmem [resolvable:$true] %s186_s22 }
  0x75   :  { %191 = dma.vmem_to_hbm [thread:$0]  %s187_s22, 128, %s189_s20, [#allocation7]  }
  0x76   :  { %301 = dma.done.wait [#allocation7], 128  }
  0x77   :  { %302 = vsyncadd [#allocation7], 4294967168 }
  0x78   :  { %196 = vsyncpa [#allocation6], 1 }
  0x79   :  { %197 = vsyncpa [#allocation9], 1 }
  0x7a   :  { %198 = vsyncpa [#allocation7], 1 }

</bundles_post_ra>
